<compile_context>
chip_gen: v6e
topology: v6e:2x2x1
jax: 0.10.0
libtpu: 0.0.40
codegen_flags: <defaults>
</compile_context>

<pallas_src>
import functools

import jax
import jax.numpy as jnp
from jax.experimental import pallas as pl
from jax.experimental.pallas import tpu as pltpu


def _round_up(x, m):
    return (x + m - 1) // m * m


def _supcon_row_block_kernel(q_ref, k_ref, tq_ref, tk_ref, out_ref, *,
                             inv_temp, n_valid):
    # q_ref : (TM, Dp)   query rows (pipelined block, matmul dtype)
    # k_ref : (Np, Dp)   all projection rows (fully VMEM-resident, single copy)
    # tq_ref: (TM, 1)    int32 targets for this row block
    # tk_ref: (1,  Np)   int32 targets, lane-resident row (fully resident)
    # out_ref: (TM, 1)   float32 per-row loss
    block_rows = q_ref.shape[0]
    n_pad = k_ref.shape[0]
    padded = n_valid < n_pad
    row0 = pl.program_id(0) * block_rows

    # Fold 1/temperature into the small (TM, D) operand; scale in f32 first so a
    # bf16 MXU operand only pays one rounding.
    q_raw = q_ref[...]
    q_f32 = q_raw.astype(jnp.float32) * inv_temp
    q_mm = q_f32.astype(q_raw.dtype)

    # Gram row-block on the MXU: contract the feature (lane) dim of BOTH operands,
    # so no transposed key copy / XLU transpose is materialized.
    s = jax.lax.dot_general(
        q_mm, k_ref[...],
        dimension_numbers=(((1,), (1,)), ((), ())),
        preferred_element_type=jnp.float32)                       # (TM, Np) f32

    if padded:
        # Padded key columns must not influence the row max / denominator.
        col_valid = jax.lax.broadcasted_iota(jnp.int32, (1, n_pad), 1) < n_valid
        s = jnp.where(col_valid, s, -jnp.inf)

    s_max = jnp.max(s, axis=1, keepdims=True)                     # (TM, 1)
    exp_dot = jnp.exp(s - s_max) + 1e-5                           # (TM, Np)
    log_exp = jnp.log(exp_dot)                                    # (TM, Np), keeps +1e-5 parity

    # ---- diagonal corrections (no (TM, Np) combined-mask tensors) ----
    # s_ii recomputed from the exact same operands (the q block rows ARE key rows
    # [row0, row0+TM)); the ~1e-6 accumulation-order noise only ever enters a log().
    diag_s = jnp.sum(q_mm.astype(jnp.float32) * q_raw.astype(jnp.float32),
                     axis=1, keepdims=True)                       # (TM, 1)
    diag_log = jnp.log(jnp.exp(diag_s - s_max) + 1e-5)            # (TM, 1)

    # Denominator: off-diagonal row sum.  The self column is excluded bit-exactly
    # with a mask because log(small denom) is sensitive to absolute error.
    cols_g = jax.lax.broadcasted_iota(jnp.int32, (block_rows, n_pad), 1)
    rows_g = row0 + jax.lax.broadcasted_iota(jnp.int32, (block_rows, 1), 0)
    not_self = cols_g != rows_g                                   # (TM, Np) bool
    denom = jnp.sum(jnp.where(not_self, exp_dot, 0.0), axis=1, keepdims=True)
    if padded:
        # Every padded column contributed exactly exp(-inf) + 1e-5 == 1e-5 above.
        denom = denom - (n_pad - n_valid) * 1e-5

    # Positives stay boolean; cardinality uses the exact "-1 for self" correction.
    same_class = tq_ref[...] == tk_ref[...]                       # (TM, Np) bool
    if padded:
        same_class = jnp.logical_and(same_class, col_valid)
    pos = same_class.astype(jnp.float32)
    card = jnp.sum(pos, axis=1, keepdims=True) - 1.0
    pos_log_sum = jnp.sum(pos * log_exp, axis=1, keepdims=True) - diag_log

    # sum_j mask*(-log(e_ij/denom_i))/card_i == log(denom_i) - sum_j mask*log(e_ij)/card_i
    # Singleton classes give card == 0 -> non-finite row loss (matches the reference).
    out_ref[...] = jnp.log(denom) - pos_log_sum / card


def supcon_loss(projections, targets, *, temperature=0.07, block_rows=128,
                matmul_dtype=None):
    """projections: (N, D), targets: (N,) int -> scalar float32 mean SupCon loss.

    block_rows: row tile (128 default; 256 recommended on v6e).
    matmul_dtype: dtype of the MXU operands (None = keep input dtype; jnp.bfloat16
      halves the resident-key footprint and runs the MXU at native rate).
    """
    n, d = projections.shape
    if matmul_dtype is None:
        matmul_dtype = projections.dtype

    block_rows = _round_up(min(int(block_rows), _round_up(n, 8)), 8)
    n_pad = _round_up(n, block_rows)      # pad ragged N instead of collapsing the grid
    d_pad = _round_up(d, 128)             # lane/MXU-contraction alignment (exact: zero pad)
    num_blocks = n_pad // block_rows      # on v7x prefer >= 2 blocks so both TCs get work

    proj = projections.astype(matmul_dtype)
    if n_pad != n or d_pad != d:
        proj = jnp.pad(proj, ((0, n_pad - n), (0, d_pad - d)))
    tgt = targets.astype(jnp.int32)
    if n_pad != n:
        tgt = jnp.pad(tgt, (0, n_pad - n), constant_values=-1)   # sentinel; cols masked in-kernel
    tgt_col = tgt.reshape(n_pad, 1)
    tgt_row = tgt.reshape(1, n_pad)

    # VMEM budget: single-buffered resident keys + target row, double-buffered
    # row blocks, plus ~4 live (TM, Np) f32 temporaries; 2x headroom, HW-capped.
    itemsize = jnp.dtype(matmul_dtype).itemsize
    est = (n_pad * d_pad * itemsize
           + n_pad * 4
           + 2 * block_rows * (d_pad * itemsize + 8)
           + 4 * block_rows * n_pad * 4)
    try:
        hw_vmem = pltpu.get_tpu_info().vmem_capacity_bytes
    except Exception:
        hw_vmem = 64 * 2 ** 20
    vmem_limit = int(min(int(0.9 * hw_vmem), max(32 * 2 ** 20, 2 * est)))

    kernel = functools.partial(_supcon_row_block_kernel,
                               inv_temp=1.0 / temperature, n_valid=n)

    per_row = pl.pallas_call(
        kernel,
        out_shape=jax.ShapeDtypeStruct((n_pad, 1), jnp.float32),
        grid=(num_blocks,),
        in_specs=[
            pl.BlockSpec((block_rows, d_pad), lambda i: (i, 0)),      # query row block (pipelined)
            pl.BlockSpec(memory_space=pltpu.MemorySpace.VMEM),        # all keys: resident, single copy
            pl.BlockSpec((block_rows, 1), lambda i: (i, 0)),          # targets column slice
            pl.BlockSpec(memory_space=pltpu.MemorySpace.VMEM),        # target row: resident, single copy
        ],
        out_specs=pl.BlockSpec((block_rows, 1), lambda i: (i, 0)),
        compiler_params=pltpu.CompilerParams(
            dimension_semantics=("parallel",),
            vmem_limit_bytes=vmem_limit),
    )(proj, proj, tgt_col, tgt_row)

    # Drop padded rows, then a trivial mean in plain JAX.
    return jnp.mean(per_row[:n, 0])


def _supcon_ref(projections, targets, temperature=0.07):
    """Pure-JAX reference mirroring the PyTorch forward."""
    p = projections.astype(jnp.float32)
    s = (p @ p.T) / temperature
    e = jnp.exp(s - jnp.max(s, axis=1, keepdims=True)) + 1e-5
    mask_sim = (targets[:, None] == targets[None, :]).astype(jnp.float32)
    mask_anchor = 1.0 - jnp.eye(p.shape[0], dtype=jnp.float32)
    mask_comb = mask_sim * mask_anchor
    card = jnp.sum(mask_comb, axis=1)
    log_prob = -jnp.log(e / jnp.sum(e * mask_anchor, axis=1, keepdims=True))
    loss = jnp.sum(log_prob * mask_comb, axis=1) / card
    return jnp.mean(loss)


if __name__ == "__main__":
    key = jax.random.PRNGKey(0)
    N, D = 16, 32
    kp, _ = jax.random.split(key)

    projections = jax.random.normal(kp, (N, D), dtype=jnp.float32)
    # L2-normalize rows (typical SupCon usage).
    projections = projections / jnp.linalg.norm(projections, axis=1, keepdims=True)
    # Every class has >= 2 members so cardinality > 0 (no reference NaNs).
    targets = jnp.array([0, 0, 1, 1, 2, 2, 3, 3, 4, 4, 5, 5, 6, 6, 7, 7],
                        dtype=jnp.int32)

    ref = _supcon_ref(projections, targets)

    # f32 path, block_rows=8 -> 2 row blocks (exercises the grid / megacore split).
    loss = supcon_loss(projections, targets, block_rows=8)
    jax.block_until_ready(loss)
    assert jnp.allclose(loss, ref, rtol=2e-4, atol=2e-4), (loss, ref)

    # Ragged N (14 rows, tile 8): exercises the padding + column-mask path.
    loss_rag = supcon_loss(projections[:14], targets[:14], block_rows=8)
    ref_rag = _supcon_ref(projections[:14], targets[:14])
    assert jnp.allclose(loss_rag, ref_rag, rtol=2e-4, atol=2e-4), (loss_rag, ref_rag)

    # bf16 MXU operands (elementwise math stays f32); loose smoke tolerance.
    loss_bf16 = supcon_loss(projections, targets, block_rows=8,
                            matmul_dtype=jnp.bfloat16)
    jax.block_until_ready(loss_bf16)
    assert bool(jnp.isfinite(loss_bf16)) and abs(float(loss_bf16) - float(ref)) < 0.5, \
        (loss_bf16, ref)

    print("KERNEL_OK")
</pallas_src>

<mosaic_0001>
module attributes {stable_mosaic.version = 11 : i64} {
  func.func @_supcon_row_block_kernel(%arg0: i32, %arg1: memref<8x128xf32, #tpu.memory_space<vmem>>, %arg2: memref<16x128xf32, #tpu.memory_space<vmem>>, %arg3: memref<8x1xi32, #tpu.memory_space<vmem>>, %arg4: memref<1x16xi32, #tpu.memory_space<vmem>>, %arg5: memref<8x1xf32, #tpu.memory_space<vmem>>) attributes {dimension_semantics = [#tpu.dimension_semantics<parallel>], iteration_bounds = array<i64: 2>, scalar_prefetch = 0 : i64, scratch_operands = 0 : i64, tpu.core_type = #tpu.core_type<tc>, window_params = [{transform_indices = @transform_0, window_bounds = array<i64: 8, 128>}, {pipeline_mode = #tpu.pipeline_mode<synchronous>, transform_indices = @transform_1, window_bounds = array<i64: 16, 128>}, {transform_indices = @transform_2, window_bounds = array<i64: 8, 1>}, {pipeline_mode = #tpu.pipeline_mode<synchronous>, transform_indices = @transform_3, window_bounds = array<i64: 1, 16>}, {transform_indices = @transform_4, window_bounds = array<i64: 8, 1>}]} {
    %c8_i32 = arith.constant 8 : i32
    %0 = arith.muli %arg0, %c8_i32 : i32
    %c0 = arith.constant 0 : index
    %c0_0 = arith.constant 0 : index
    %1 = vector.load %arg1[%c0, %c0_0] : memref<8x128xf32, #tpu.memory_space<vmem>>, vector<8x128xf32>
    %cst = arith.constant 14.2857141 : f32
    %2 = vector.broadcast %cst : f32 to vector<8x128xf32>
    %3 = arith.mulf %1, %2 : vector<8x128xf32>
    %c0_1 = arith.constant 0 : index
    %c0_2 = arith.constant 0 : index
    %4 = vector.load %arg2[%c0_1, %c0_2] : memref<16x128xf32, #tpu.memory_space<vmem>>, vector<16x128xf32>
    %cst_3 = arith.constant dense<0.000000e+00> : vector<8x16xf32>
    %5 = tpu.matmul %3, %4, %cst_3 {dimension_numbers = #tpu.dot_dimension_numbers<[1], [1], [0], [0], [0, 0, 1, 0], [], []>} : vector<8x128xf32>, vector<16x128xf32>, vector<8x16xf32> -> vector<8x16xf32>
    %cst_4 = arith.constant dense<0xFF800000> : vector<8xf32>
    %6 = vector.multi_reduction <maximumf>, %5, %cst_4 [1] : vector<8x16xf32> to vector<8xf32>
    %7 = vector.shape_cast %6 : vector<8xf32> to vector<8x1xf32>
    %8 = vector.broadcast %7 : vector<8x1xf32> to vector<8x16xf32>
    %9 = arith.subf %5, %8 : vector<8x16xf32>
    %10 = math.exp %9 : vector<8x16xf32>
    %cst_5 = arith.constant 9.99999974E-6 : f32
    %11 = vector.broadcast %cst_5 : f32 to vector<8x16xf32>
    %12 = arith.addf %10, %11 : vector<8x16xf32>
    %13 = math.log %12 : vector<8x16xf32>
    %14 = arith.mulf %3, %1 : vector<8x128xf32>
    %cst_6 = arith.constant dense<0.000000e+00> : vector<8xf32>
    %15 = vector.multi_reduction <add>, %14, %cst_6 [1] : vector<8x128xf32> to vector<8xf32>
    %16 = vector.shape_cast %15 : vector<8xf32> to vector<8x1xf32>
    %17 = arith.subf %16, %7 : vector<8x1xf32>
    %18 = math.exp %17 : vector<8x1xf32>
    %cst_7 = arith.constant 9.99999974E-6 : f32
    %19 = vector.broadcast %cst_7 : f32 to vector<8x1xf32>
    %20 = arith.addf %18, %19 : vector<8x1xf32>
    %21 = math.log %20 : vector<8x1xf32>
    %22 = tpu.iota {dimensions = array<i32: 1>} : vector<8x16xi32>
    %23 = tpu.iota {dimensions = array<i32: 0>} : vector<8x1xi32>
    %24 = vector.broadcast %0 : i32 to vector<8x1xi32>
    %25 = arith.addi %24, %23 : vector<8x1xi32>
    %26 = vector.broadcast %25 : vector<8x1xi32> to vector<8x16xi32>
    %27 = arith.cmpi ne, %22, %26 : vector<8x16xi32>
    %cst_8 = arith.constant 0.000000e+00 : f32
    %28 = vector.broadcast %cst_8 : f32 to vector<8x16xf32>
    %29 = arith.select %27, %12, %28 : vector<8x16xi1>, vector<8x16xf32>
    %cst_9 = arith.constant dense<0.000000e+00> : vector<8xf32>
    %30 = vector.multi_reduction <add>, %29, %cst_9 [1] : vector<8x16xf32> to vector<8xf32>
    %31 = vector.shape_cast %30 : vector<8xf32> to vector<8x1xf32>
    %c0_10 = arith.constant 0 : index
    %c0_11 = arith.constant 0 : index
    %32 = vector.load %arg3[%c0_10, %c0_11] : memref<8x1xi32, #tpu.memory_space<vmem>>, vector<8x1xi32>
    %c0_12 = arith.constant 0 : index
    %c0_13 = arith.constant 0 : index
    %33 = vector.load %arg4[%c0_12, %c0_13] : memref<1x16xi32, #tpu.memory_space<vmem>>, vector<1x16xi32>
    %34 = vector.broadcast %32 : vector<8x1xi32> to vector<8x16xi32>
    %35 = vector.broadcast %33 : vector<1x16xi32> to vector<8x16xi32>
    %36 = arith.cmpi eq, %34, %35 : vector<8x16xi32>
    %37 = arith.extui %36 : vector<8x16xi1> to vector<8x16xi32>
    %38 = arith.sitofp %37 : vector<8x16xi32> to vector<8x16xf32>
    %cst_14 = arith.constant dense<0.000000e+00> : vector<8xf32>
    %39 = vector.multi_reduction <add>, %38, %cst_14 [1] : vector<8x16xf32> to vector<8xf32>
    %40 = vector.shape_cast %39 : vector<8xf32> to vector<8x1xf32>
    %cst_15 = arith.constant 1.000000e+00 : f32
    %41 = vector.broadcast %cst_15 : f32 to vector<8x1xf32>
    %42 = arith.subf %40, %41 : vector<8x1xf32>
    %43 = arith.mulf %38, %13 : vector<8x16xf32>
    %cst_16 = arith.constant dense<0.000000e+00> : vector<8xf32>
    %44 = vector.multi_reduction <add>, %43, %cst_16 [1] : vector<8x16xf32> to vector<8xf32>
    %45 = vector.shape_cast %44 : vector<8xf32> to vector<8x1xf32>
    %46 = arith.subf %45, %21 : vector<8x1xf32>
    %47 = math.log %31 : vector<8x1xf32>
    %48 = arith.divf %46, %42 : vector<8x1xf32>
    %49 = arith.subf %47, %48 : vector<8x1xf32>
    %c0_17 = arith.constant 0 : index
    %c0_18 = arith.constant 0 : index
    %50 = vector.load %arg5[%c0_17, %c0_18] : memref<8x1xf32, #tpu.memory_space<vmem>>, vector<8x1xf32>
    tpu.vector_store %arg5[%c0_17, %c0_18], %49 {strides = array<i32>} : memref<8x1xf32, #tpu.memory_space<vmem>>, vector<8x1xf32>,
    return
  }
  func.func @transform_0(%arg0: i32) -> (i32, i32) {
    %c0_i32 = arith.constant 0 : i32
    %c0_i32_0 = arith.constant 0 : i32
    return %arg0, %c0_i32 : i32, i32
  }
  func.func @transform_1(%arg0: i32) -> (i32, i32) {
    %c0_i32 = arith.constant 0 : i32
    %c0_i32_0 = arith.constant 0 : i32
    %c0_i32_1 = arith.constant 0 : i32
    return %c0_i32, %c0_i32_0 : i32, i32
  }
  func.func @transform_2(%arg0: i32) -> (i32, i32) {
    %c0_i32 = arith.constant 0 : i32
    %c0_i32_0 = arith.constant 0 : i32
    return %arg0, %c0_i32 : i32, i32
  }
  func.func @transform_3(%arg0: i32) -> (i32, i32) {
    %c0_i32 = arith.constant 0 : i32
    %c0_i32_0 = arith.constant 0 : i32
    %c0_i32_1 = arith.constant 0 : i32
    return %c0_i32, %c0_i32_0 : i32, i32
  }
  func.func @transform_4(%arg0: i32) -> (i32, i32) {
    %c0_i32 = arith.constant 0 : i32
    %c0_i32_0 = arith.constant 0 : i32
    return %arg0, %c0_i32 : i32, i32
  }
}

</mosaic_0001>

<bundles_post_ra>
// kernel: tpu_custom_call.1
= control target key start
LH: loop header
LB: loop body
LE: loop exit
PB: predicated region body
PF: predicated region fallthrough
CT: control target
= control target key end

     0   :  { %9 = vsyncpa [#allocation3], 0  ;;  %s567_s15 = smov 0   ;;  %s622_s0 = inlined_call_operand.vmem [shape: f32[16,128], index: 0, kind: input, shape index: {}]   ;;  %s623_s1 = inlined_call_operand.hbm [shape: f32[16,128], index: 1, kind: input, shape index: {}]   ;;  %s624_s2 = inlined_call_operand.vmem [shape: s32[16,1], index: 2, kind: input, shape index: {}]   ;;  %s625_s3 = inlined_call_operand.vmem [shape: s32[1,16], index: 3, kind: input, shape index: {}]   ;;  %s626_s4 = inlined_call_operand.vmem [shape: f32[16,1], index: 4, kind: output, shape index: {}]  }
   0x1 LB: > { %s573_s16 = sadd.s32 4294967295, %s534_s15   ;;  %p437_p0 = scmp.ge.s32.totalorder %s534_s15, 1  ;;  %s534_s15 = sphi %s567_s15, %s15_s15  }
   0x2   : > { %p140_p1 = scmp.lt.s32.totalorder %s534_s15, 3  ;;  %s536_s17 = smov [#allocation2]  }
   0x3   : > { %s152_s18 = sshll.u32 %s536_s17, 4  ;;  %p469_p3 = scmp.eq.s32.totalorder %s573_s16, 0  ;;  %s153_s18 = int_to_ptr.vmem [resolvable:$true] %s152_s18 }
   0x4   : > { %p577_p2 = pnand %p437_p0, %p140_p1  ;;  %s509_s20 = scalar_lea.vmem %s153_s18, 256 }
   0x5   : > { %p510_p7 = scmp.ne.s32.totalorder %s153_s18, %s509_s20  ;;  %p517_p10 = scmp.lt.s32.totalorder %s153_s18, %s153_s18 }
   0x6   : > { %p465_p4 = pneg %p577_p2  ;;  %p518_p11 = scmp.lt.s32.totalorder %s509_s20, %s509_s20 }
   0x8   : > { %p466_p5 = pnand %p469_p3, %p465_p4  ;;  %p519_p12 = por %p518_p11, %p517_p10 }
   0xa   : > { %p500_p6 = pneg %p466_p5 }
   0xc   : > { %p512_p8 = pnand %p510_p7, %p500_p6 }
   0xe   : > { %p513_p9 = pneg %p512_p8 }
  0x10   : > { %p520_p13 = pnand %p519_p12, %p513_p9 }
  0x12   : > { %523 = shalt.err (!%p520_p13)
}
  0x13   : > { %s537_s21 = smov 128   ;;  %s538_s22 = smov 8  }
  0x14   : > { %468 = dma.hbm_to_vmem [thread:$0]  (!%p466_p5), %s623_s1, 256, %s153_s18, [#allocation3], %s537_s21, %s537_s21, %s538_s22  }
  0x15   : > { %185 = sbr.rel (%p577_p2) target bundleno = 552 (0x228), region = 36 }
  0x1a   : > { %529 = dma.done.wait (%p469_p3), [#allocation3], 256  }
  0x1b   : > { %531 = vsyncadd (%p469_p3), [#allocation3], 4294967040  ;;  %p213_p0 = scmp.lt.s32.totalorder %s573_s16, 1  ;;  %v539_v0 = vmov 0.0   ;;  %vm540_vm0 = vmmov 0   ;;  %v229_v1 = vld [vmem:[#allocation2 + $0x8] sm:$0xff]  ;;  %v319_v15 = vlaneseq }
  0x1c   : > { %454 = vmatprep.subr.mxu0 %v539_v0  ;;  %458 = vmatprep.mubr.msk.f32.mxu0 %vm540_vm0, %v539_v0  ;;  %v228_v3 = vld [vmem:[#allocation2] sm:$0xff]  ;;  %v541_v6 = vmov 0   ;;  %vm300_vm1 = vcmask 130048   ;;  %s445_s9 = sshll.u32 %s573_s16, 3  ;;  %vm356_vm4 = vcmask 7168  }
  0x1d   : > { %s214_s25 = scalar_select %p213_p0, %s573_s16, 1  ;;  %455 = vmatpush3.xpose.msra.mxu0 %v229_v1  ;;  %485 = vset.pattern.permute.xlu0 %v541_v6  ;;  %v446_v14 = vld [vmem:[%s625_s3] ss:$0 sm:$0xff]  ;;  %v322_v18 = vshrl.u32 %v319_v15, 7  ;;  %v323_v20 = vstv %s445_s9  ;;  %v320_v21 = vand.u32 127, %v319_v15 }
  0x1e   : > { %456 = vmatprep.subr.mxu0 %v539_v0 }
  0x1f   : > { %s597_s26 = sshll.u32 %s214_s25, 3  ;;  %v324_v22 = vadd.s32 %v323_v20, %v322_v18 }
  0x20   : > { %s216_s29 = scalar_lea.vmem %s622_s0, %s597_s26  ;;  %s220_s6 = scalar_lea.vmem %s624_s2, %s597_s26 }
  0x21   : > { %v226_v2 = vld [vmem:[%s216_s29] sm:$0xff]  ;;  %457 = vmatpush3.xpose.msra.mxu0 %v228_v3  ;;  %vm325_vm3 = vcmp.ne.s32.totalorder %v320_v21, %v324_v22  ;;  %s224_s12 = scalar_lea.vmem %s626_s4, %s597_s26 }
  0x22   : > { %v227_v4 = vmul.f32 14.285714, %v226_v2  ;;  %v330_v10 = vld [vmem:[%s220_s6] sm:$0xff] }
  0x24   : > { %459 = vmatmul.mubr.f32.vlgmr.msra.gmra.mxu0 %v227_v4  ;;  %v310_v5 = vmul.f32 %v227_v4, %v226_v2 }
  0x26   : > { %311 = vadd.xlane.f32.xlu1 %v310_v5 }
  0xaf   : > { %v312_v31 = vpop.xlane.xlu1 %311 }
  0xe4   : > { %v296_v7 = vpop.f32.mrf.mxu0 }
  0xe5   : > { %v301_v8 = vsel %vm300_vm1, %v296_v7, -inf }
  0xe6   : > { %302 = vmax.xlane.f32.xlu0 %v301_v8  ;;  %v460_v9 = vpop.f32.mrf.mxu0 }
  0xfc   : > { %333 = vperm.xlu0 %485, %v330_v10  }
 0x16f   : > { %v303_v11 = vpop.xlane.xlu0 %302 }
 0x170   : > { %v304_v12 = vsub.f32 %v296_v7, %v303_v11  ;;  %v313_v32 = vsub.f32 %v312_v31, %v303_v11 }
 0x172   : > { %v305_v13 = vmul.f32 1.442695, %v304_v12  ;;  %v314_v33 = vmul.f32 1.442695, %v313_v32 }
 0x174   : > { %486 = vpow2.f32 %v305_v13 }
 0x177   : > { %v334_v16 = vpop.permute.xlu0 %333 }
 0x178   : > { %vm339_vm2 = vcmp.eq.s32.totalorder %v334_v16, %v446_v14 }
 0x179   : > { %v447_v17 = vsel %vm339_vm2, 1.0, %v539_v0 }
 0x17a   : > { %v342_v19 = vsel %vm300_vm1, %v447_v17, 0.0 }
 0x17b   : > { %343 = vadd.xlane.f32.xlu1 %v342_v19 }
 0x181   : > { %v487_v23 = vpop.eup %486 }
 0x182   : > { %v307_v24 = vadd.f32 1e-05, %v487_v23 }
 0x184   : > { %488 = vlog2.f32 %v307_v24  ;;  %v326_v25 = vsel %vm325_vm3, %v307_v24, 0.0 }
 0x185   : > { %v327_v26 = vsel %vm300_vm1, %v326_v25, 0.0  ;;  %490 = vpow2.f32 %v314_v33 }
 0x186   : > { %328 = vadd.xlane.f32.xlu1 %v327_v26 }
 0x191   : > { %v489_v27 = vpop.eup %488 }
 0x192   : > { %v309_v28 = vmul.f32 0.6931472, %v489_v27  ;;  %v491_v34 = vpop.eup %490 }
 0x193   : > { %v316_v36 = vadd.f32 1e-05, %v491_v34 }
 0x194   : > { %v346_v29 = vmul.f32 %v447_v17, %v309_v28 }
 0x195   : > { %492 = vlog2.f32 %v316_v36 }
 0x196   : > { %v347_v30 = vsel %vm300_vm1, %v346_v29, 0.0 }
 0x197   : > { %348 = vadd.xlane.f32.xlu1 %v347_v30 }
 0x1a2   : > { %v493_v39 = vpop.eup %492 }
 0x1a3   : > { %v318_v40 = vmul.f32 0.6931472, %v493_v39 }
 0x204   : > { %v344_v35 = vpop.xlane.xlu1 %343 }
 0x205   : > { %v448_v38 = vadd.f32 -1.0, %v344_v35 }
 0x20f   : > { %v329_v37 = vpop.xlane.xlu1 %328 }
 0x210   : > { %494 = vlog2.f32 %v329_v37 }
 0x211   : > { %496 = vrcp.f32 %v448_v38 }
 0x21d   : > { %v495_v41 = vpop.eup %494 }
 0x21e   : > { %v497_v44 = vpop.eup %496  ;;  %v352_v45 = vmul.f32 0.6931472, %v495_v41 }
 0x220   : > { %v349_v42 = vpop.xlane.xlu1 %348 }
 0x221   : > { %v350_v43 = vsub.f32 %v349_v42, %v318_v40 }
 0x223   : > { %v354_v46 = vmul.f32 %v497_v44, %v350_v43 }
 0x225   : > { %v355_v47 = vsub.f32 %v352_v45, %v354_v46 }
 0x227   : > { %357 = vst.msk [vmem:[%s224_s12] sm:$0xff] %vm356_vm4, %v355_v47 }
 0x228 PF: > { %s15_s15 = sadd.s32 1, %s534_s15  }
 0x229   : > { %p12_p1 = scmp.ge.s32.totalorder %s15_s15, 4  }
 0x22b   :  { %14 = sbr.rel (!%p12_p1) target bundleno = 1 (0x1), region = 74 }
 0x230   :  { %377 = vsyncpa [#allocation3], 1 }
 0x231   :  { %379 = vsyncpa [#allocation3 + $0x1], 1 }

</bundles_post_ra>
